<compile_context>
chip_gen: v7x
topology: tpu7x:2x2x1
jax: 0.10.0
libtpu: 0.0.40
codegen_flags: <defaults>
</compile_context>

<pallas_src>
import jax
import jax.numpy as jnp
import numpy as np
from jax.experimental import pallas as pl

ALPHA = 0.6
BETA = 0.3
GAMMA = 0.05
DELTA = 0.05

# Closed-form BCE-with-logits for indicator logits x in {0, 1}:
#   bce(x, z) = max(x, 0) - x*z + log(1 + exp(-|x|))
#   x == 0 -> log(2)
#   x == 1 -> (1 - z) + log(1 + exp(-1))
_BCE_X0 = 0.6931471805599453          # log(2)
_BCE_X1_BASE = 0.3132616875182228     # log(1 + exp(-1))


def _loss_kernel(final_ref, tgt_ref, prev_ref, tmdo_ref, out_ref):
    final = final_ref[...]            # (1, N), N = B*D, lane-dense
    tgt = tgt_ref[...]                # (1, N)
    prev = prev_ref[...]              # (1, N)  prev_price broadcast over D
    tmdo = tmdo_ref[...]              # (1, M), M = B*F, lane-dense

    n = final.shape[-1]
    m = tmdo.shape[-1]

    diff = final - tgt                # for MSE
    pred_diff = final - prev          # also the smoothness term

    # Direction loss: BCE-with-logits applied to 0/1 indicator "logits"
    # (exact PyTorch semantics), as a constant select — no exp/log needed.
    z = (tgt - prev > 0.0).astype(jnp.float32)
    bce = jnp.where(pred_diff > 0.0, (1.0 - z) + _BCE_X1_BASE, _BCE_X0)

    # Fuse the three N-length reductions into one (3, N) cross-lane sum.
    # (Built with iota+select instead of concatenate: pure VPU broadcasts.)
    row = jax.lax.broadcasted_iota(jnp.int32, (3, n), 0)
    stacked = jnp.where(row == 0, diff * diff,
              jnp.where(row == 1, bce, jnp.abs(pred_diff)))      # (3, N)
    sums = jnp.sum(stacked, axis=-1, keepdims=True)              # (3, 1)

    inv_n = 1.0 / float(n)
    mse = sums[0:1, :] * inv_n                                   # (1, 1)
    direction = sums[1:2, :] * inv_n
    smooth = sums[2:3, :] * inv_n

    tmdo_reg = jnp.sum(jnp.abs(tmdo), axis=-1, keepdims=True) * (1.0 / float(m))

    total = ALPHA * mse + BETA * direction + GAMMA * smooth + DELTA * tmdo_reg

    # Pack [total, mse, direction, smooth, tmdo_reg] into lanes 0..4 of one
    # lane-dense (1, 128) output: one store / one writeback DMA.
    lane = jax.lax.broadcasted_iota(jnp.int32, out_ref.shape, 1)
    packed = jnp.where(lane == 0, total,
             jnp.where(lane == 1, mse,
             jnp.where(lane == 2, direction,
             jnp.where(lane == 3, smooth,
             jnp.where(lane == 4, tmdo_reg, 0.0)))))
    out_ref[...] = packed


@jax.jit
def lstm_combined_loss(predictions, targets, prev_price, tmdo_features):
    predictions = predictions.astype(jnp.float32)
    targets = targets.astype(jnp.float32)
    prev_price = prev_price.astype(jnp.float32)
    tmdo_features = tmdo_features.astype(jnp.float32)

    B, T, D = predictions.shape
    F = tmdo_features.shape[-1]
    N = B * D
    M = B * F

    # Layout plumbing (wrapper side, not compute):
    #  * only the last timestep is gathered out of HBM (T x less traffic into
    #    the kernel than shipping the whole (B, T, D) tensor),
    #  * the batch axis lands on the lane (last, 128-wide) dimension,
    #  * prev_price is pre-broadcast over D (the unsqueeze(-1) glue).
    final = predictions[:, -1, :].reshape(1, N)
    tgt = targets.reshape(1, N)
    prev = jnp.broadcast_to(prev_price.reshape(B, 1), (B, D)).reshape(1, N)
    tmdo = tmdo_features.reshape(1, M)

    packed = pl.pallas_call(
        _loss_kernel,
        out_shape=jax.ShapeDtypeStruct((1, 128), jnp.float32),
        grid=(1,),
        in_specs=[
            pl.BlockSpec((1, N), lambda i: (0, 0)),
            pl.BlockSpec((1, N), lambda i: (0, 0)),
            pl.BlockSpec((1, N), lambda i: (0, 0)),
            pl.BlockSpec((1, M), lambda i: (0, 0)),
        ],
        out_specs=pl.BlockSpec((1, 128), lambda i: (0, 0)),
    )(final, tgt, prev, tmdo)

    total = packed[0, 0]
    components = {
        "mse": packed[0, 1],
        "direction": packed[0, 2],
        "smoothness": packed[0, 3],
        "tmdo_reg": packed[0, 4],
    }
    return total, components


def _reference(predictions, targets, prev_price, tmdo_features):
    final = predictions[:, -1, :]
    mse = jnp.mean((final - targets) ** 2)
    prev = prev_price[:, None]
    pred_diff = final - prev
    target_diff = targets - prev
    x = (pred_diff > 0).astype(jnp.float32)
    z = (target_diff > 0).astype(jnp.float32)
    direction = jnp.mean(jnp.maximum(x, 0.0) - x * z + jnp.log1p(jnp.exp(-jnp.abs(x))))
    smooth = jnp.mean(jnp.abs(pred_diff))
    tmdo_reg = jnp.mean(jnp.abs(tmdo_features))
    total = ALPHA * mse + BETA * direction + GAMMA * smooth + DELTA * tmdo_reg
    return total, mse, direction, smooth, tmdo_reg


if __name__ == "__main__":
    key = jax.random.PRNGKey(0)
    k1, k2, k3, k4 = jax.random.split(key, 4)

    B, T, D, F = 8, 8, 1, 16
    predictions = jax.random.normal(k1, (B, T, D), dtype=jnp.float32)
    targets = jax.random.normal(k2, (B, D), dtype=jnp.float32)
    prev_price = jax.random.normal(k3, (B,), dtype=jnp.float32)
    tmdo_features = jax.random.normal(k4, (B, F), dtype=jnp.float32)

    total, comps = lstm_combined_loss(predictions, targets, prev_price, tmdo_features)
    total = jax.block_until_ready(total)

    ref_total, ref_mse, ref_dir, ref_smooth, ref_tmdo = _reference(
        predictions, targets, prev_price, tmdo_features)
    np.testing.assert_allclose(np.asarray(total), np.asarray(ref_total), rtol=1e-5, atol=1e-5)
    np.testing.assert_allclose(np.asarray(comps["mse"]), np.asarray(ref_mse), rtol=1e-5, atol=1e-5)
    np.testing.assert_allclose(np.asarray(comps["direction"]), np.asarray(ref_dir), rtol=1e-5, atol=1e-5)
    np.testing.assert_allclose(np.asarray(comps["smoothness"]), np.asarray(ref_smooth), rtol=1e-5, atol=1e-5)
    np.testing.assert_allclose(np.asarray(comps["tmdo_reg"]), np.asarray(ref_tmdo), rtol=1e-5, atol=1e-5)

    print("KERNEL_OK")
</pallas_src>

<mosaic_0001>
module attributes {stable_mosaic.version = 11 : i64} {
  func.func @_loss_kernel(%arg0: i32, %arg1: memref<1x8xf32, #tpu.memory_space<vmem>>, %arg2: memref<1x8xf32, #tpu.memory_space<vmem>>, %arg3: memref<1x8xf32, #tpu.memory_space<vmem>>, %arg4: memref<1x128xf32, #tpu.memory_space<vmem>>, %arg5: memref<1x128xf32, #tpu.memory_space<vmem>>) attributes {dimension_semantics = [#tpu.dimension_semantics<arbitrary>], iteration_bounds = array<i64: 1>, scalar_prefetch = 0 : i64, scratch_operands = 0 : i64, tpu.core_type = #tpu.core_type<tc>, window_params = [{pipeline_mode = #tpu.pipeline_mode<synchronous>, transform_indices = @transform_0, window_bounds = array<i64: 1, 8>}, {pipeline_mode = #tpu.pipeline_mode<synchronous>, transform_indices = @transform_1, window_bounds = array<i64: 1, 8>}, {pipeline_mode = #tpu.pipeline_mode<synchronous>, transform_indices = @transform_2, window_bounds = array<i64: 1, 8>}, {pipeline_mode = #tpu.pipeline_mode<synchronous>, transform_indices = @transform_3, window_bounds = array<i64: 1, 128>}, {pipeline_mode = #tpu.pipeline_mode<synchronous>, transform_indices = @transform_4, window_bounds = array<i64: 1, 128>}]} {
    %c0 = arith.constant 0 : index
    %c0_0 = arith.constant 0 : index
    %0 = vector.load %arg1[%c0, %c0_0] : memref<1x8xf32, #tpu.memory_space<vmem>>, vector<1x8xf32>
    %c0_1 = arith.constant 0 : index
    %c0_2 = arith.constant 0 : index
    %1 = vector.load %arg2[%c0_1, %c0_2] : memref<1x8xf32, #tpu.memory_space<vmem>>, vector<1x8xf32>
    %c0_3 = arith.constant 0 : index
    %c0_4 = arith.constant 0 : index
    %2 = vector.load %arg3[%c0_3, %c0_4] : memref<1x8xf32, #tpu.memory_space<vmem>>, vector<1x8xf32>
    %c0_5 = arith.constant 0 : index
    %c0_6 = arith.constant 0 : index
    %3 = vector.load %arg4[%c0_5, %c0_6] : memref<1x128xf32, #tpu.memory_space<vmem>>, vector<1x128xf32>
    %4 = arith.subf %0, %1 : vector<1x8xf32>
    %5 = arith.subf %0, %2 : vector<1x8xf32>
    %6 = arith.subf %1, %2 : vector<1x8xf32>
    %cst = arith.constant 0.000000e+00 : f32
    %7 = vector.broadcast %cst : f32 to vector<1x8xf32>
    %8 = arith.cmpf ogt, %6, %7 : vector<1x8xf32>
    %9 = arith.extui %8 : vector<1x8xi1> to vector<1x8xi32>
    %10 = arith.sitofp %9 : vector<1x8xi32> to vector<1x8xf32>
    %cst_7 = arith.constant 0.000000e+00 : f32
    %11 = vector.broadcast %cst_7 : f32 to vector<1x8xf32>
    %12 = arith.cmpf ogt, %5, %11 : vector<1x8xf32>
    %cst_8 = arith.constant 1.000000e+00 : f32
    %13 = vector.broadcast %cst_8 : f32 to vector<1x8xf32>
    %14 = arith.subf %13, %10 : vector<1x8xf32>
    %cst_9 = arith.constant 0.313261688 : f32
    %15 = vector.broadcast %cst_9 : f32 to vector<1x8xf32>
    %16 = arith.addf %14, %15 : vector<1x8xf32>
    %cst_10 = arith.constant 0.693147182 : f32
    %17 = vector.broadcast %cst_10 : f32 to vector<1x8xf32>
    %18 = arith.select %12, %16, %17 : vector<1x8xi1>, vector<1x8xf32>
    %19 = tpu.iota {dimensions = array<i32: 0>} : vector<3x8xi32>
    %c0_i32 = arith.constant 0 : i32
    %20 = vector.broadcast %c0_i32 : i32 to vector<3x8xi32>
    %21 = arith.cmpi eq, %19, %20 : vector<3x8xi32>
    %22 = arith.mulf %4, %4 : vector<1x8xf32>
    %c1_i32 = arith.constant 1 : i32
    %23 = vector.broadcast %c1_i32 : i32 to vector<3x8xi32>
    %24 = arith.cmpi eq, %19, %23 : vector<3x8xi32>
    %25 = math.absf %5 : vector<1x8xf32>
    %26 = vector.shape_cast %18 : vector<1x8xf32> to vector<1x8xf32>
    %27 = vector.broadcast %26 : vector<1x8xf32> to vector<3x8xf32>
    %28 = vector.shape_cast %25 : vector<1x8xf32> to vector<1x8xf32>
    %29 = vector.broadcast %28 : vector<1x8xf32> to vector<3x8xf32>
    %30 = arith.select %24, %27, %29 : vector<3x8xi1>, vector<3x8xf32>
    %31 = vector.shape_cast %22 : vector<1x8xf32> to vector<1x8xf32>
    %32 = vector.broadcast %31 : vector<1x8xf32> to vector<3x8xf32>
    %33 = arith.select %21, %32, %30 : vector<3x8xi1>, vector<3x8xf32>
    %cst_11 = arith.constant dense<0.000000e+00> : vector<3xf32>
    %34 = vector.multi_reduction <add>, %33, %cst_11 [1] : vector<3x8xf32> to vector<3xf32>
    %35 = vector.shape_cast %34 : vector<3xf32> to vector<3x1xf32>
    %36 = vector.extract_strided_slice %35 {offsets = [0, 0], sizes = [1, 1], strides = [1, 1]} : vector<3x1xf32> to vector<1x1xf32>
    %cst_12 = arith.constant 1.250000e-01 : f32
    %37 = vector.broadcast %cst_12 : f32 to vector<1x1xf32>
    %38 = arith.mulf %36, %37 : vector<1x1xf32>
    %39 = vector.extract_strided_slice %35 {offsets = [1, 0], sizes = [1, 1], strides = [1, 1]} : vector<3x1xf32> to vector<1x1xf32>
    %cst_13 = arith.constant 1.250000e-01 : f32
    %40 = vector.broadcast %cst_13 : f32 to vector<1x1xf32>
    %41 = arith.mulf %39, %40 : vector<1x1xf32>
    %42 = vector.extract_strided_slice %35 {offsets = [2, 0], sizes = [1, 1], strides = [1, 1]} : vector<3x1xf32> to vector<1x1xf32>
    %cst_14 = arith.constant 1.250000e-01 : f32
    %43 = vector.broadcast %cst_14 : f32 to vector<1x1xf32>
    %44 = arith.mulf %42, %43 : vector<1x1xf32>
    %45 = math.absf %3 : vector<1x128xf32>
    %cst_15 = arith.constant dense<0.000000e+00> : vector<1xf32>
    %46 = vector.multi_reduction <add>, %45, %cst_15 [1] : vector<1x128xf32> to vector<1xf32>
    %47 = vector.shape_cast %46 : vector<1xf32> to vector<1x1xf32>
    %cst_16 = arith.constant 7.812500e-03 : f32
    %48 = vector.broadcast %cst_16 : f32 to vector<1x1xf32>
    %49 = arith.mulf %47, %48 : vector<1x1xf32>
    %cst_17 = arith.constant 6.000000e-01 : f32
    %50 = vector.broadcast %cst_17 : f32 to vector<1x1xf32>
    %51 = arith.mulf %50, %38 : vector<1x1xf32>
    %cst_18 = arith.constant 3.000000e-01 : f32
    %52 = vector.broadcast %cst_18 : f32 to vector<1x1xf32>
    %53 = arith.mulf %52, %41 : vector<1x1xf32>
    %54 = arith.addf %51, %53 : vector<1x1xf32>
    %cst_19 = arith.constant 5.000000e-02 : f32
    %55 = vector.broadcast %cst_19 : f32 to vector<1x1xf32>
    %56 = arith.mulf %55, %44 : vector<1x1xf32>
    %57 = arith.addf %54, %56 : vector<1x1xf32>
    %cst_20 = arith.constant 5.000000e-02 : f32
    %58 = vector.broadcast %cst_20 : f32 to vector<1x1xf32>
    %59 = arith.mulf %58, %49 : vector<1x1xf32>
    %60 = arith.addf %57, %59 : vector<1x1xf32>
    %61 = tpu.iota {dimensions = array<i32: 1>} : vector<1x128xi32>
    %c0_i32_21 = arith.constant 0 : i32
    %62 = vector.broadcast %c0_i32_21 : i32 to vector<1x128xi32>
    %63 = arith.cmpi eq, %61, %62 : vector<1x128xi32>
    %c1_i32_22 = arith.constant 1 : i32
    %64 = vector.broadcast %c1_i32_22 : i32 to vector<1x128xi32>
    %65 = arith.cmpi eq, %61, %64 : vector<1x128xi32>
    %c2_i32 = arith.constant 2 : i32
    %66 = vector.broadcast %c2_i32 : i32 to vector<1x128xi32>
    %67 = arith.cmpi eq, %61, %66 : vector<1x128xi32>
    %c3_i32 = arith.constant 3 : i32
    %68 = vector.broadcast %c3_i32 : i32 to vector<1x128xi32>
    %69 = arith.cmpi eq, %61, %68 : vector<1x128xi32>
    %c4_i32 = arith.constant 4 : i32
    %70 = vector.broadcast %c4_i32 : i32 to vector<1x128xi32>
    %71 = arith.cmpi eq, %61, %70 : vector<1x128xi32>
    %cst_23 = arith.constant 0.000000e+00 : f32
    %72 = vector.shape_cast %49 : vector<1x1xf32> to vector<1x1xf32>
    %73 = vector.broadcast %72 : vector<1x1xf32> to vector<1x128xf32>
    %74 = vector.broadcast %cst_23 : f32 to vector<1x128xf32>
    %75 = arith.select %71, %73, %74 : vector<1x128xi1>, vector<1x128xf32>
    %76 = vector.shape_cast %44 : vector<1x1xf32> to vector<1x1xf32>
    %77 = vector.broadcast %76 : vector<1x1xf32> to vector<1x128xf32>
    %78 = arith.select %69, %77, %75 : vector<1x128xi1>, vector<1x128xf32>
    %79 = vector.shape_cast %41 : vector<1x1xf32> to vector<1x1xf32>
    %80 = vector.broadcast %79 : vector<1x1xf32> to vector<1x128xf32>
    %81 = arith.select %67, %80, %78 : vector<1x128xi1>, vector<1x128xf32>
    %82 = vector.shape_cast %38 : vector<1x1xf32> to vector<1x1xf32>
    %83 = vector.broadcast %82 : vector<1x1xf32> to vector<1x128xf32>
    %84 = arith.select %65, %83, %81 : vector<1x128xi1>, vector<1x128xf32>
    %85 = vector.shape_cast %60 : vector<1x1xf32> to vector<1x1xf32>
    %86 = vector.broadcast %85 : vector<1x1xf32> to vector<1x128xf32>
    %87 = arith.select %63, %86, %84 : vector<1x128xi1>, vector<1x128xf32>
    %c0_24 = arith.constant 0 : index
    %c0_25 = arith.constant 0 : index
    %88 = vector.load %arg5[%c0_24, %c0_25] : memref<1x128xf32, #tpu.memory_space<vmem>>, vector<1x128xf32>
    tpu.vector_store %arg5[%c0_24, %c0_25], %87 {strides = array<i32>} : memref<1x128xf32, #tpu.memory_space<vmem>>, vector<1x128xf32>,
    return
  }
  func.func @transform_0(%arg0: i32) -> (i32, i32) {
    %c0_i32 = arith.constant 0 : i32
    %c0_i32_0 = arith.constant 0 : i32
    %c0_i32_1 = arith.constant 0 : i32
    return %c0_i32, %c0_i32_0 : i32, i32
  }
  func.func @transform_1(%arg0: i32) -> (i32, i32) {
    %c0_i32 = arith.constant 0 : i32
    %c0_i32_0 = arith.constant 0 : i32
    %c0_i32_1 = arith.constant 0 : i32
    return %c0_i32, %c0_i32_0 : i32, i32
  }
  func.func @transform_2(%arg0: i32) -> (i32, i32) {
    %c0_i32 = arith.constant 0 : i32
    %c0_i32_0 = arith.constant 0 : i32
    %c0_i32_1 = arith.constant 0 : i32
    return %c0_i32, %c0_i32_0 : i32, i32
  }
  func.func @transform_3(%arg0: i32) -> (i32, i32) {
    %c0_i32 = arith.constant 0 : i32
    %c0_i32_0 = arith.constant 0 : i32
    %c0_i32_1 = arith.constant 0 : i32
    return %c0_i32, %c0_i32_0 : i32, i32
  }
  func.func @transform_4(%arg0: i32) -> (i32, i32) {
    %c0_i32 = arith.constant 0 : i32
    %c0_i32_0 = arith.constant 0 : i32
    %c0_i32_1 = arith.constant 0 : i32
    return %c0_i32, %c0_i32_0 : i32, i32
  }
}

</mosaic_0001>

<bundles_post_ra>
// kernel: lstm_combined_loss.1
= control target key start
LH: loop header
LB: loop body
LE: loop exit
PB: predicated region body
PF: predicated region fallthrough
CT: control target
= control target key end

     0   :  { %v31_v0 = vlaneseq  ;;  %v117_v8 = vmov 0.0   ;;  %vm57_vm4 = vcmask 59392   ;;  %vm63_vm5 = vcmask 1040384   ;;  %s159_s0 = inlined_call_operand.vmem [shape: f32[1,8], index: 0, kind: input, shape index: {}]   ;;  %s160_s1 = inlined_call_operand.vmem [shape: f32[1,8], index: 1, kind: input, shape index: {}]   ;;  %s161_s2 = inlined_call_operand.vmem [shape: f32[1,8], index: 2, kind: input, shape index: {}]   ;;  %s162_s3 = inlined_call_operand.vmem [shape: f32[1,128], index: 3, kind: input, shape index: {}]   ;;  %s163_s4 = inlined_call_operand.vmem [shape: f32[1,128], index: 4, kind: output, shape index: {}]  }
   0x1   :  { %v17_v1 = vld [vmem:[%s159_s0] sm:$0x1]  ;;  %v118_v25 = vmov 0  }
   0x2   :  { %v18_v2 = vld [vmem:[%s160_s1] sm:$0x1]  ;;  %v32_v7 = vshrl.u32 %v31_v0, 7  ;;  %115 = vset.pattern.permute.xlu1 %v118_v25  ;;  %116 = vset.pattern.permute.xlu0 %v118_v25  ;;  %v82_v26 = vand.u32 127, %v31_v0 }
   0x3   :  { %v19_v3 = vld [vmem:[%s161_s2] sm:$0x1]  ;;  %v21_v4 = vsub.f32 %v17_v1, %v18_v2 }
   0x4   :  { %v22_v5 = vsub.f32 %v17_v1, %v19_v3  ;;  %v23_v6 = vsub.f32 %v18_v2, %v19_v3  ;;  %v40_v11 = vsub.s32 0, %v32_v7  ;;  %vm35_vm2 = vcmp.eq.s32.totalorder %v32_v7, 1  ;;  %v20_v18 = vld [vmem:[%s162_s3] sm:$0x1] }
   0x5   :  { %v34_v13 = vmul.f32 %v21_v4, %v21_v4  ;;  %vm33_vm3 = vcmp.eq.s32.totalorder %v32_v7, 0  ;;  %v62_v21 = vand.u32 2147483647, %v20_v18  ;;  %vm87_vm6 = vcmp.eq.s32.totalorder %v82_v26, 4 }
   0x6   :  { %vm24_vm0 = vcmp.gt.f32.partialorder %v23_v6, 0.0  ;;  %v36_v10 = vand.u32 2147483647, %v22_v5  ;;  %vm27_vm1 = vcmp.gt.f32.partialorder %v22_v5, 0.0  ;;  %vm86_vm7 = vcmp.eq.s32.totalorder %v82_v26, 3 }
   0x7   :  { %v112_v9 = vsel %vm24_vm0, 1.0, %v117_v8  ;;  %v54_v17 = vrot.slane %v34_v13, %v40_v11  ;;  %v64_v24 = vsel %vm63_vm5, %v62_v21, 0.0  ;;  %vm85_vm8 = vcmp.eq.s32.totalorder %v82_v26, 2 }
   0x8   :  { %v28_v12 = vsub.f32 1.0, %v112_v9  ;;  %v47_v15 = vrot.slane %v36_v10, %v40_v11  ;;  %vm84_vm9 = vcmp.eq.s32.totalorder %v82_v26, 1  ;;  %vm83_vm10 = vcmp.eq.s32.totalorder %v82_v26, 0 }
   0xa   :  { %v29_v14 = vadd.f32 0.3132617, %v28_v12 }
   0xc   :  { %v30_v16 = vsel %vm27_vm1, %v29_v14, 0.6931472 }
   0xd   :  { %v41_v19 = vrot.slane %v30_v16, %v40_v11 }
   0xf   :  { %v49_v20 = vsel %vm35_vm2, %v41_v19, %v47_v15 }
  0x10   :  { %v56_v22 = vsel %vm33_vm3, %v54_v17, %v49_v20 }
  0x11   :  { %v58_v23 = vsel %vm57_vm4, %v56_v22, 0.0 }
  0x12   :  { %59 = vadd.xlane.f32.xlu0 %v58_v23 }
  0x16   :  { %65 = vadd.xlane.f32.xlu0 %v64_v24 }
  0x9f   :  { %v60_v27 = vpop.xlane.xlu0 %59 }
  0xa0   :  { %v61_v28 = vmul.f32 0.125, %v60_v27 }
  0xa2   :  { %v69_v29 = vmul.f32 0.3, %v61_v28  ;;  %v74_v30 = vmul.f32 0.05, %v61_v28  ;;  %v68_v33 = vmul.f32 0.6, %v61_v28 }
  0xa3   :  { %v66_v31 = vpop.xlane.xlu0 %65 }
  0xa4   :  { %v67_v32 = vmul.f32 0.0078125, %v66_v31  ;;  %v71_v34 = vrot.slane %v69_v29, 1  ;;  %v76_v38 = vrot.slane %v74_v30, 2 }
  0xa6   :  { %v79_v35 = vmul.f32 0.05, %v67_v32  ;;  %v88_v36 = vsel %vm87_vm6, %v67_v32, 0.0  ;;  %v73_v37 = vadd.f32 %v71_v34, %v68_v33 }
  0xa7   :  { %v90_v39 = vrot.slane %v88_v36, 6 }
  0xa8   :  { %v78_v40 = vadd.f32 %v76_v38, %v73_v37 }
  0xa9   :  { %v92_v41 = vsel %vm86_vm7, %v61_v28, %v90_v39 }
  0xaa   :  { %v94_v42 = vrot.slane %v92_v41, 1  ;;  %v80_v43 = vadd.f32 %v79_v35, %v78_v40 }
  0xac   :  { %103 = vperm.xlu1 %115, %v80_v43   ;;  %v96_v44 = vsel %vm85_vm8, %v61_v28, %v94_v42 }
  0xad   :  { %v98_v45 = vrot.slane %v96_v44, 1 }
  0xaf   :  { %v100_v46 = vsel %vm84_vm9, %v61_v28, %v98_v45 }
 0x12b   :  { %v104_v47 = vpop.permute.xlu1 %103 }
 0x12c   :  { %v106_v48 = vsel %vm83_vm10, %v104_v47, %v100_v46 }
 0x12d   :  { %107 = vst [vmem:[%s163_s4] sm:$0x1] %v106_v48 }

</bundles_post_ra>
